<compile_context>
chip_gen: v5e
topology: v5e:2x2
jax: 0.10.0
libtpu: 0.0.40
codegen_flags: <defaults>
</compile_context>

<pallas_src>
import jax
import jax.numpy as jnp
from jax.experimental import pallas as pl
from jax.experimental.pallas import tpu as pltpu

_NORM_EPS = 1e-12  # guards a zero row of y; negligible for real inputs


def _linear_l2norm_kernel(x_ref, w_ref, b_ref, o_ref):
    # Linear: y = x @ W + b  (MXU matmul, f32 accumulation even for bf16 inputs)
    y = jnp.dot(x_ref[...], w_ref[...], preferred_element_type=jnp.float32)
    y = y + b_ref[...]                                        # (TB, D) + (1, D)
    # Normalize(power=2): out = y / sqrt(sum(y^2, axis=-1))
    sq_sum = jnp.sum(y * y, axis=-1, keepdims=True)           # (TB, 1)
    inv_norm = jax.lax.rsqrt(jnp.maximum(sq_sum, _NORM_EPS))  # single EUP op
    o_ref[...] = (y * inv_norm).astype(o_ref.dtype)


def _round_up(x, m):
    return ((x + m - 1) // m) * m


def _pick_tile_b(B, F, D, in_bytes, out_bytes, *, vmem_budget_bytes,
                 weight_buffers=1):
    """Largest batch tile whose pipeline buffers fit the VMEM budget."""
    resident = weight_buffers * (F * D * in_bytes + D * 4)    # weight + bias
    per_row = 2 * (F * in_bytes + D * out_bytes)              # dbl-buffered feat/out tiles
    avail = max(vmem_budget_bytes - resident, 0)
    tile_b = max(8, min(1024, avail // max(per_row, 1)))
    tile_b = max(8, (tile_b // 8) * 8)                        # sublane multiple
    if B > 8:
        # Keep >= 2 grid steps so the "parallel" batch axis can shard across
        # the two TensorCores of a v7x chip (no-op on v5e/v6e).
        tile_b = min(tile_b, _round_up(pl.cdiv(B, 2), 8))
    return min(tile_b, _round_up(B, 8))


def _build_call(B_pad, F, D, tile_b, out_dtype, *, single_buffer_weights,
                vmem_limit_bytes):
    wb_kwargs = (
        dict(pipeline_mode=pl.Buffered(1)) if single_buffer_weights else {}
    )
    return pl.pallas_call(
        _linear_l2norm_kernel,
        out_shape=jax.ShapeDtypeStruct((B_pad, D), out_dtype),
        grid_spec=pltpu.PrefetchScalarGridSpec(
            num_scalar_prefetch=0,
            grid=(B_pad // tile_b,),
            in_specs=[
                pl.BlockSpec((tile_b, F), lambda i: (i, 0)),           # feat tile
                pl.BlockSpec((F, D), lambda i: (0, 0), **wb_kwargs),   # resident weight
                pl.BlockSpec((1, D), lambda i: (0, 0), **wb_kwargs),   # resident bias
            ],
            out_specs=pl.BlockSpec((tile_b, D), lambda i: (i, 0)),
        ),
        compiler_params=pltpu.CompilerParams(
            dimension_semantics=("parallel",),
            vmem_limit_bytes=vmem_limit_bytes,
        ),
    )


def linear_transformation_norm(feat, weight, bias, *, compute_dtype=None,
                               vmem_budget_bytes=16 * 1024 * 1024,
                               vmem_limit_bytes=None):
    """feat: (B, F); weight: (F, D); bias: (D,) -> (B, D) L2-normalized rows."""
    B, F = feat.shape
    F2, D = weight.shape
    assert F == F2
    assert bias.shape == (D,)

    out_dtype = feat.dtype
    if compute_dtype is not None:
        # bf16 matmul inputs (f32 MXU accumulation) ~2x MXU throughput and
        # halves weight traffic on v6e/v7x; epilogue stays f32.
        feat = feat.astype(compute_dtype)
        weight = weight.astype(compute_dtype)
    bias2d = bias.astype(jnp.float32).reshape(1, D)

    tile_b = _pick_tile_b(
        B, F, D,
        in_bytes=jnp.dtype(feat.dtype).itemsize,
        out_bytes=jnp.dtype(out_dtype).itemsize,
        vmem_budget_bytes=vmem_budget_bytes,
    )
    B_pad = _round_up(B, tile_b)
    if B_pad != B:
        feat = jnp.pad(feat, ((0, B_pad - B), (0, 0)))

    args = (feat, weight, bias2d)
    try:
        out = _build_call(B_pad, F, D, tile_b, out_dtype,
                          single_buffer_weights=True,
                          vmem_limit_bytes=vmem_limit_bytes)(*args)
    except Exception:
        # Fallback if pipeline_mode=pl.Buffered(1) is not supported by this
        # jax build: default double-buffering (only costs extra VMEM).
        out = _build_call(B_pad, F, D, tile_b, out_dtype,
                          single_buffer_weights=False,
                          vmem_limit_bytes=vmem_limit_bytes)(*args)
    return out[:B]


def _reference(feat, weight, bias):
    y = feat @ weight + bias[None, :]
    norm = jnp.sqrt(jnp.sum(y * y, axis=1, keepdims=True))
    return y / norm


if __name__ == "__main__":
    # Small shapes consistent with the module (num_feat -> low_dim, L2 norm).
    # B deliberately not a multiple of the tile to exercise padding + grid=2.
    B, NUM_FEAT, LOW_DIM = 50, 32, 128

    key = jax.random.PRNGKey(0)
    k_x, k_w, k_b = jax.random.split(key, 3)

    feat = jax.random.normal(k_x, (B, NUM_FEAT), dtype=jnp.float32)

    # Deterministic nn.Linear-style init: U(-1/sqrt(fan_in), 1/sqrt(fan_in)).
    bound = 1.0 / jnp.sqrt(jnp.float32(NUM_FEAT))
    weight = jax.random.uniform(
        k_w, (NUM_FEAT, LOW_DIM), dtype=jnp.float32, minval=-bound, maxval=bound
    )
    bias = jax.random.uniform(
        k_b, (LOW_DIM,), dtype=jnp.float32, minval=-bound, maxval=bound
    )

    ref = _reference(feat, weight, bias)

    # f32 path: exact semantics of the PyTorch module.
    out = jax.block_until_ready(linear_transformation_norm(feat, weight, bias))
    assert out.shape == (B, LOW_DIM)
    assert jnp.allclose(out, ref, atol=1e-5, rtol=1e-5), "f32 mismatch vs reference"

    # bf16 matmul path (perf option for v6e/v7x), looser tolerance.
    out_bf16 = jax.block_until_ready(
        linear_transformation_norm(feat, weight, bias, compute_dtype=jnp.bfloat16)
    )
    assert out_bf16.shape == (B, LOW_DIM)
    assert jnp.allclose(out_bf16, ref, atol=3e-2, rtol=3e-2), "bf16 mismatch vs reference"

    print("KERNEL_OK")
</pallas_src>

<mosaic_0001>
module attributes {stable_mosaic.version = 11 : i64} {
  func.func @_linear_l2norm_kernel(%arg0: i32, %arg1: memref<32x32xf32, #tpu.memory_space<vmem>>, %arg2: memref<32x128xf32, #tpu.memory_space<vmem>>, %arg3: memref<1x128xf32, #tpu.memory_space<vmem>>, %arg4: memref<32x128xf32, #tpu.memory_space<vmem>>) attributes {dimension_semantics = [#tpu.dimension_semantics<parallel>], iteration_bounds = array<i64: 2>, scalar_prefetch = 0 : i64, scratch_operands = 0 : i64, tpu.core_type = #tpu.core_type<tc>, window_params = [{transform_indices = @transform_0, window_bounds = array<i64: 32, 32>}, {pipeline_mode = #tpu.pipeline_mode<synchronous>, transform_indices = @transform_1, window_bounds = array<i64: 32, 128>}, {pipeline_mode = #tpu.pipeline_mode<synchronous>, transform_indices = @transform_2, window_bounds = array<i64: 1, 128>}, {transform_indices = @transform_3, window_bounds = array<i64: 32, 128>}]} {
    %c0 = arith.constant 0 : index
    %c0_0 = arith.constant 0 : index
    %0 = vector.load %arg1[%c0, %c0_0] : memref<32x32xf32, #tpu.memory_space<vmem>>, vector<32x32xf32>
    %c0_1 = arith.constant 0 : index
    %c0_2 = arith.constant 0 : index
    %1 = vector.load %arg2[%c0_1, %c0_2] : memref<32x128xf32, #tpu.memory_space<vmem>>, vector<32x128xf32>
    %cst = arith.constant dense<0.000000e+00> : vector<32x128xf32>
    %2 = tpu.matmul %0, %1, %cst {dimension_numbers = #tpu.dot_dimension_numbers<[1], [0], [0], [1], [0, 0, 1, 1], [], []>} : vector<32x32xf32>, vector<32x128xf32>, vector<32x128xf32> -> vector<32x128xf32>
    %c0_3 = arith.constant 0 : index
    %c0_4 = arith.constant 0 : index
    %3 = vector.load %arg3[%c0_3, %c0_4] : memref<1x128xf32, #tpu.memory_space<vmem>>, vector<1x128xf32>
    %4 = vector.broadcast %3 : vector<1x128xf32> to vector<32x128xf32>
    %5 = arith.addf %2, %4 : vector<32x128xf32>
    %6 = arith.mulf %5, %5 : vector<32x128xf32>
    %cst_5 = arith.constant dense<0.000000e+00> : vector<32xf32>
    %7 = vector.multi_reduction <add>, %6, %cst_5 [1] : vector<32x128xf32> to vector<32xf32>
    %8 = vector.shape_cast %7 : vector<32xf32> to vector<32x1xf32>
    %cst_6 = arith.constant 9.99999996E-13 : f32
    %9 = vector.broadcast %cst_6 : f32 to vector<32x1xf32>
    %10 = arith.maximumf %8, %9 : vector<32x1xf32>
    %11 = math.rsqrt %10 : vector<32x1xf32>
    %12 = vector.broadcast %11 : vector<32x1xf32> to vector<32x128xf32>
    %13 = arith.mulf %5, %12 : vector<32x128xf32>
    %c0_7 = arith.constant 0 : index
    %c0_8 = arith.constant 0 : index
    %14 = vector.load %arg4[%c0_7, %c0_8] : memref<32x128xf32, #tpu.memory_space<vmem>>, vector<32x128xf32>
    tpu.vector_store %arg4[%c0_7, %c0_8], %13 {strides = array<i32>} : memref<32x128xf32, #tpu.memory_space<vmem>>, vector<32x128xf32>,
    return
  }
  func.func @transform_0(%arg0: i32) -> (i32, i32) {
    %c0_i32 = arith.constant 0 : i32
    %c0_i32_0 = arith.constant 0 : i32
    return %arg0, %c0_i32 : i32, i32
  }
  func.func @transform_1(%arg0: i32) -> (i32, i32) {
    %c0_i32 = arith.constant 0 : i32
    %c0_i32_0 = arith.constant 0 : i32
    %c0_i32_1 = arith.constant 0 : i32
    return %c0_i32, %c0_i32_0 : i32, i32
  }
  func.func @transform_2(%arg0: i32) -> (i32, i32) {
    %c0_i32 = arith.constant 0 : i32
    %c0_i32_0 = arith.constant 0 : i32
    %c0_i32_1 = arith.constant 0 : i32
    return %c0_i32, %c0_i32_0 : i32, i32
  }
  func.func @transform_3(%arg0: i32) -> (i32, i32) {
    %c0_i32 = arith.constant 0 : i32
    %c0_i32_0 = arith.constant 0 : i32
    return %arg0, %c0_i32 : i32, i32
  }
}

module attributes {stable_mosaic.version = 11 : i64} {
  func.func @_linear_l2norm_kernel(%arg0: i32, %arg1: memref<32x32xf32, #tpu.memory_space<vmem>>, %arg2: memref<32x128xf32, #tpu.memory_space<vmem>>, %arg3: memref<1x128xf32, #tpu.memory_space<vmem>>, %arg4: memref<32x128xf32, #tpu.memory_space<vmem>>) attributes {dimension_semantics = [#tpu.dimension_semantics<parallel>], iteration_bounds = array<i64: 2>, scalar_prefetch = 0 : i64, scratch_operands = 0 : i64, tpu.core_type = #tpu.core_type<tc>, window_params = [{transform_indices = @transform_0, window_bounds = array<i64: 32, 32>}, {pipeline_mode = #tpu.pipeline_mode<synchronous>, transform_indices = @transform_1, window_bounds = array<i64: 32, 128>}, {pipeline_mode = #tpu.pipeline_mode<synchronous>, transform_indices = @transform_2, window_bounds = array<i64: 1, 128>}, {transform_indices = @transform_3, window_bounds = array<i64: 32, 128>}]} {
    %c0 = arith.constant 0 : index
    %c0_0 = arith.constant 0 : index
    %0 = vector.load %arg1[%c0, %c0_0] : memref<32x32xf32, #tpu.memory_space<vmem>>, vector<32x32xf32>
    %c0_1 = arith.constant 0 : index
    %c0_2 = arith.constant 0 : index
    %1 = vector.load %arg2[%c0_1, %c0_2] : memref<32x128xf32, #tpu.memory_space<vmem>>, vector<32x128xf32>
    %cst = arith.constant dense<0.000000e+00> : vector<32x128xf32>
    %2 = tpu.matmul %0, %1, %cst {dimension_numbers = #tpu.dot_dimension_numbers<[1], [0], [0], [1], [0, 0, 1, 1], [], []>} : vector<32x32xf32>, vector<32x128xf32>, vector<32x128xf32> -> vector<32x128xf32>
    %c0_3 = arith.constant 0 : index
    %c0_4 = arith.constant 0 : index
    %3 = vector.load %arg3[%c0_3, %c0_4] : memref<1x128xf32, #tpu.memory_space<vmem>>, vector<1x128xf32>
    %4 = vector.broadcast %3 : vector<1x128xf32> to vector<32x128xf32>
    %5 = arith.addf %2, %4 : vector<32x128xf32>
    %6 = arith.mulf %5, %5 : vector<32x128xf32>
    %cst_5 = arith.constant dense<0.000000e+00> : vector<32xf32>
    %7 = vector.multi_reduction <add>, %6, %cst_5 [1] : vector<32x128xf32> to vector<32xf32>
    %8 = vector.shape_cast %7 : vector<32xf32> to vector<32x1xf32>
    %cst_6 = arith.constant 9.99999996E-13 : f32
    %9 = vector.broadcast %cst_6 : f32 to vector<32x1xf32>
    %10 = arith.maximumf %8, %9 : vector<32x1xf32>
    %11 = math.rsqrt %10 : vector<32x1xf32>
    %12 = vector.broadcast %11 : vector<32x1xf32> to vector<32x128xf32>
    %13 = arith.mulf %5, %12 : vector<32x128xf32>
    %c0_7 = arith.constant 0 : index
    %c0_8 = arith.constant 0 : index
    %14 = vector.load %arg4[%c0_7, %c0_8] : memref<32x128xf32, #tpu.memory_space<vmem>>, vector<32x128xf32>
    tpu.vector_store %arg4[%c0_7, %c0_8], %13 {strides = array<i32>} : memref<32x128xf32, #tpu.memory_space<vmem>>, vector<32x128xf32>,
    return
  }
  func.func @transform_0(%arg0: i32) -> (i32, i32) {
    %c0_i32 = arith.constant 0 : i32
    %c0_i32_0 = arith.constant 0 : i32
    return %arg0, %c0_i32 : i32, i32
  }
  func.func @transform_1(%arg0: i32) -> (i32, i32) {
    %c0_i32 = arith.constant 0 : i32
    %c0_i32_0 = arith.constant 0 : i32
    %c0_i32_1 = arith.constant 0 : i32
    return %c0_i32, %c0_i32_0 : i32, i32
  }
  func.func @transform_2(%arg0: i32) -> (i32, i32) {
    %c0_i32 = arith.constant 0 : i32
    %c0_i32_0 = arith.constant 0 : i32
    %c0_i32_1 = arith.constant 0 : i32
    return %c0_i32, %c0_i32_0 : i32, i32
  }
  func.func @transform_3(%arg0: i32) -> (i32, i32) {
    %c0_i32 = arith.constant 0 : i32
    %c0_i32_0 = arith.constant 0 : i32
    return %arg0, %c0_i32 : i32, i32
  }
}

</mosaic_0001>

<bundles_post_ra>
// kernel: tpu_custom_call.1
= control target key start
LH: loop header
LB: loop body
LE: loop exit
PB: predicated region body
PF: predicated region fallthrough
CT: control target
= control target key end

     0   :  { %8 = vsyncpa [#allocation3], 0  ;;  %s653_s0 = inlined_call_operand.vmem [shape: f32[64,32], index: 0, kind: input, shape index: {}]   ;;  %s654_s1 = inlined_call_operand.vmem [shape: f32[32,128], index: 1, kind: input, shape index: {}]   ;;  %s655_s2 = inlined_call_operand.vmem [shape: f32[1,128], index: 2, kind: input, shape index: {}]   ;;  %s656_s3 = inlined_call_operand.hbm [shape: f32[64,128], index: 3, kind: output, shape index: {}]  }
   0x1   :  { %10 = vsyncpa [#allocation3 + $0x1], 0  ;;  %s533_s12 = smov 0   ;;  %s535_s13 = smov 0  }
   0x2   :  { %s537_s14 = smov 0   ;;  %s539_s15 = smov 0  }
   0x3 LB: > { %s554_s16 = sadd.s32 4294967295, %s509_s15   ;;  %s368_s17 = sadd.s32 4294967294, %s509_s15   ;;  %s509_s15 = sphi %s539_s15, %s662_s15   ;;  %s505_s14 = sphi %s537_s14, %s661_s14   ;;  %s501_s13 = sphi %s535_s13, %s660_s13   ;;  %s497_s12 = sphi %s533_s12, %s659_s12  }
   0x4   : > { %s558_s18 = sadd.s32 1, %s509_s15   ;;  %s91_s19 = sadd.s32 1, %s505_s14 }
   0x5   : > { %s88_s20 = ssub.s32 %s509_s15, %s558_s18  ;;  %p101_p0 = scmp.ne.s32.totalorder %s505_s14, %s501_s13 }
   0x6   : > { %p89_p1 = scmp.eq.s32.totalorder %s88_s20, 0  ;;  %p102_p2 = scmp.eq.s32.totalorder %s554_s16, 1 }
   0x7   : > { %p107_p3 = scmp.ne.s32.totalorder %s501_s13, %s497_s12  ;;  %p108_p4 = scmp.eq.s32.totalorder %s368_s17, 1 }
   0x8   : > { %s569_s21 = scalar_select %p89_p1, %s505_s14, %s91_s19  }
   0x9   : > { %p571_p5 = por %p102_p2, %p101_p0  ;;  %p575_p6 = por %p108_p4, %p107_p3 }
   0xa   : > { %p371_p7 = scmp.ge.s32.totalorder %s509_s15, 1  ;;  %p141_p8 = scmp.lt.s32.totalorder %s509_s15, 3 }
   0xc   : > { %p142_p9 = pnand %p371_p7, %p141_p8 }
   0xd   : > { %s373_s28 = sshll.u32 (!%p142_p9), %s554_s16, 2  ;;  %s162_s17 = sand.u32 (!%p142_p9), 1, %s501_s13  }
   0xe   : > { %145 = sbr.rel (%p142_p9) target bundleno = 313 (0x139), region = 32  ;;  %p166_p10 = scmp.lt.s32.totalorder (!%p142_p9), %s373_s28, 7 }
   0xf   : > { %s372_s19 = sshll.u32 (!%p142_p9), %s162_s17, 5  ;;  %s384_s24 = sshll.u32 (!%p142_p9), %s554_s16, 5 }
  0x10   : > { %s611_s20 = scalar_lea.vmem (!%p142_p9), [#allocation2], %s372_s19  ;;  %s302_s27 = scalar_lea.hbm (!%p142_p9), %s656_s3, %s384_s24 }
  0x11   : > { %s303_s16 = sshll.u32 (!%p142_p9), %s611_s20, 4  ;;  %s291_s29 = scalar_lea.sflag (!%p142_p9), [#allocation3], %s162_s17  ;;  %s304_s16 = int_to_ptr.vmem [resolvable:$true] %s303_s16 }
  0x12   : > { %s467_s7 = scalar_lea.hbm (!%p142_p9), %s656_s3, 64 }
  0x13   : > { %v179_v0 = vld [vmem:[%s654_s1 + $0x18] sm:$0xff]  ;;  %v178_v1 = vld [vmem:[%s654_s1 + $0x10] sm:$0xff]  ;;  %v177_v2 = vld [vmem:[%s654_s1 + $0x8] sm:$0xff]  ;;  %s664_s28 = smov (!%p166_p10, %s373_s28), 7  ;;  %vm184_vm0 = vcmask 261120  }
  0x14   : > { %209 = vmatpush.msra.mxu0 %v179_v0  ;;  %386 = vmatpush.msra.mxu2 %v179_v0  ;;  %v176_v3 = vld [vmem:[%s654_s1] sm:$0xff]  ;;  %s374_s6 = sshll.u32 %s664_s28, 3  ;;  %s305_s28 = sshll.u32 %s302_s27, 4  ;;  %s306_s28 = int_to_ptr.hbm [resolvable:$true] %s305_s28 }
  0x15   : > { %385 = vmatpush.msra.mxu1 %v179_v0  ;;  %387 = vmatpush.msra.mxu3 %v179_v0  ;;  %s169_s9 = scalar_lea.vmem %s653_s0, %s374_s6  ;;  %v438_v8 = vld [vmem:[%s655_s2] ss:$0 sm:$0xff]  ;;  %s461_s30 = sshra.s32 %s306_s28, 4  ;;  %s462_s30 = int_to_ptr.hbm [resolvable:$true] %s461_s30 }
  0x16   : > { %210 = vmatpush.msra.mxu0 %v178_v1  ;;  %389 = vmatpush.msra.mxu2 %v178_v1  ;;  %v172_v4 = vld [vmem:[%s169_s9] sm:$0xff]  ;;  %v174_v5 = vld [vmem:[%s169_s9 + $0x10] sm:$0xff]  ;;  %v173_v6 = vld [vmem:[%s169_s9 + $0x8] sm:$0xff]  ;;  %s463_s4 = scalar_lea.hbm %s462_s30, 32  ;;  %p468_p0 = scmp.lt.s32.totalorder %s462_s30, %s656_s3 }
  0x17   : > { %388 = vmatpush.msra.mxu1 %v178_v1  ;;  %390 = vmatpush.msra.mxu3 %v178_v1  ;;  %v175_v7 = vld [vmem:[%s169_s9 + $0x18] sm:$0xff]  ;;  %p464_p11 = scmp.ne.s32.totalorder %s462_s30, %s463_s4  ;;  %p469_p1 = scmp.lt.s32.totalorder %s467_s7, %s463_s4 }
  0x18   : > { %211 = vmatpush.msra.mxu0 %v177_v2  ;;  %392 = vmatpush.msra.mxu2 %v177_v2 }
  0x19   : > { %391 = vmatpush.msra.mxu1 %v177_v2  ;;  %393 = vmatpush.msra.mxu3 %v177_v2  ;;  %p465_p12 = pnand %p464_p11, %p571_p5  ;;  %p470_p2 = por %p469_p1, %p468_p0 }
  0x1a   : > { %212 = vmatpush.msra.mxu0 %v176_v3  ;;  %395 = vmatpush.msra.mxu2 %v176_v3 }
  0x1b   : > { %375 = vmatmul.msk.f32.vlgmr.msra.gmra.mxu0 %vm184_vm0, %v172_v4  ;;  %377 = vmatmul.msk.f32.vlgmr.msra.gmra.mxu2 %vm184_vm0, %v174_v5  ;;  %p466_p13 = pneg %p465_p12 }
  0x1c   : > { %394 = vmatpush.msra.mxu1 %v176_v3  ;;  %396 = vmatpush.msra.mxu3 %v176_v3 }
  0x1d   : > { %376 = vmatmul.msk.f32.vlgmr.msra.gmra.mxu1 %vm184_vm0, %v173_v6  ;;  %378 = vmatmul.msk.f32.vlgmr.msra.gmra.mxu3 %vm184_vm0, %v175_v7  ;;  %p471_p3 = pnand %p470_p2, %p466_p13 }
  0x98   : > { %v214_v9 = vpop.f32.mrf.mxu0 }
  0x99   : > { %v215_v10 = vadd.f32 %v438_v8, %v214_v9 }
  0x9a   : > { %v217_v11 = vpop.f32.mrf.mxu1 }
  0x9b   : > { %v226_v12 = vmul.f32 %v215_v10, %v215_v10  ;;  %v600_v13 = vadd.f32 %v438_v8, %v217_v11 }
  0x9d   : > { %230 = vadd.xlane.f32.xlu0 %v226_v12  ;;  %v227_v18 = vmul.f32 %v600_v13, %v600_v13 }
  0x9e   : > { %v220_v14 = vpop.f32.mrf.mxu2 }
  0x9f   : > { %v221_v15 = vadd.f32 %v438_v8, %v220_v14 }
  0xa0   : > { %v223_v16 = vpop.f32.mrf.mxu3 }
  0xa1   : > { %v228_v17 = vmul.f32 %v221_v15, %v221_v15  ;;  %v604_v19 = vadd.f32 %v438_v8, %v223_v16 }
  0xa3   : > { %234 = vadd.xlane.f32.xlu1 %v228_v17  ;;  %v229_v20 = vmul.f32 %v604_v19, %v604_v19 }
  0xa5   : > { %232 = vadd.xlane.f32.xlu0 %v227_v18 }
  0xab   : > { %236 = vadd.xlane.f32.xlu1 %v229_v20 }
 0x110   : > { %v231_v21 = vpop.xlane.xlu0 %230 }
 0x111   : > { %v238_v22 = vmax.f32 %v231_v21, 1e-12 }
 0x113   : > { %439 = vrsqrt.f32 %v238_v22  ;;  %vm248_vm1 = vweird.f32 %v238_v22 }
 0x116   : > { %v235_v23 = vpop.xlane.xlu1 %234 }
 0x117   : > { %v240_v24 = vmax.f32 %v235_v23, 1e-12 }
 0x118   : > { %v233_v25 = vpop.xlane.xlu0 %232 }
 0x119   : > { %v440_v26 = vpop.eup %439  ;;  %441 = vrsqrt.f32 %v240_v24  ;;  %v239_v27 = vmax.f32 %v233_v25, 1e-12  ;;  %vm268_vm5 = vweird.f32 %v240_v24 }
 0x11a   : > { %v243_v28 = vmul.f32 %v440_v26, %v238_v22  ;;  %vm249_vm2 = vweird.f32 %v440_v26 }
 0x11b   : > { %443 = vrsqrt.f32 %v239_v27  ;;  %vm250_vm3 = vmor %vm248_vm1, %vm249_vm2  ;;  %vm258_vm6 = vweird.f32 %v239_v27 }
 0x11c   : > { %v244_v29 = vmul.f32 %v440_v26, %v243_v28 }
 0x11e   : > { %v245_v30 = vmul.f32 0.5, %v244_v29  ;;  %v237_v31 = vpop.xlane.xlu1 %236 }
 0x11f   : > { %v442_v32 = vpop.eup %441  ;;  %v241_v33 = vmax.f32 %v237_v31, 1e-12 }
 0x120   : > { %v246_v34 = vsub.f32 1.5, %v245_v30  ;;  %v263_v35 = vmul.f32 %v442_v32, %v240_v24  ;;  %vm269_vm4 = vweird.f32 %v442_v32 }
 0x121   : > { %v444_v36 = vpop.eup %443  ;;  %445 = vrsqrt.f32 %v241_v33  ;;  %vm270_vm8 = vmor %vm268_vm5, %vm269_vm4  ;;  %vm278_vm11 = vweird.f32 %v241_v33 }
 0x122   : > { %v247_v37 = vmul.f32 %v440_v26, %v246_v34  ;;  %v264_v38 = vmul.f32 %v442_v32, %v263_v35  ;;  %v253_v39 = vmul.f32 %v444_v36, %v239_v27  ;;  %vm259_vm7 = vweird.f32 %v444_v36 }
 0x123   : > { %vm260_vm9 = vmor %vm258_vm6, %vm259_vm7 }
 0x124   : > { %v251_v40 = vsel %vm250_vm3, %v440_v26, %v247_v37  ;;  %v265_v41 = vmul.f32 0.5, %v264_v38  ;;  %v254_v42 = vmul.f32 %v444_v36, %v253_v39 }
 0x125   : > { %v282_v43 = vmul.f32 %v251_v40, %v215_v10 }
 0x126   : > { %v266_v44 = vsub.f32 1.5, %v265_v41  ;;  %v255_v45 = vmul.f32 0.5, %v254_v42 }
 0x127   : > { %v446_v46 = vpop.eup %445  ;;  %286 = vst [vmem:[%s611_s20] sm:$0xff] %v282_v43 }
 0x128   : > { %v267_v47 = vmul.f32 %v442_v32, %v266_v44  ;;  %v256_v48 = vsub.f32 1.5, %v255_v45  ;;  %v273_v49 = vmul.f32 %v446_v46, %v241_v33  ;;  %vm279_vm10 = vweird.f32 %v446_v46 }
 0x129   : > { %vm280_vm12 = vmor %vm278_vm11, %vm279_vm10 }
 0x12a   : > { %v271_v50 = vsel %vm270_vm8, %v442_v32, %v267_v47  ;;  %v257_v51 = vmul.f32 %v444_v36, %v256_v48  ;;  %v274_v52 = vmul.f32 %v446_v46, %v273_v49 }
 0x12b   : > { %v284_v53 = vmul.f32 %v271_v50, %v221_v15 }
 0x12c   : > { %v261_v54 = vsel %vm260_vm9, %v444_v36, %v257_v51  ;;  %v275_v55 = vmul.f32 0.5, %v274_v52 }
 0x12d   : > { %288 = vst [vmem:[%s611_s20 + $0x10] sm:$0xff] %v284_v53  ;;  %v283_v56 = vmul.f32 %v261_v54, %v600_v13 }
 0x12e   : > { %v276_v57 = vsub.f32 1.5, %v275_v55 }
 0x12f   : > { %287 = vst [vmem:[%s611_s20 + $0x8] sm:$0xff] %v283_v56 }
 0x130   : > { %v277_v58 = vmul.f32 %v446_v46, %v276_v57 }
 0x132   : > { %v281_v59 = vsel %vm280_vm12, %v446_v46, %v277_v58 }
 0x133   : > { %v285_v60 = vmul.f32 %v281_v59, %v604_v19 }
 0x135   : > { %289 = vst [vmem:[%s611_s20 + $0x18] sm:$0xff] %v285_v60 }
 0x136   : > { %474 = shalt.err (!%p471_p3)
}
 0x137   : > { %s511_s10 = smov 128   ;;  %s512_s11 = smov 8  }
 0x138   : > { %397 = dma.vmem_to_hbm [thread:$0]  (%p571_p5), %s304_s16, 512, %s306_s28, %s291_s29, %s511_s10, %s511_s10, %s512_s11  }
 0x139 PF: > { %p403_p4 = scmp.ge.s32.totalorder %s509_s15, 2  ;;  %s320_s17 = sand.u32 1, %s497_s12  }
 0x13a   : > { %s321_s19 = scalar_lea.sflag [#allocation3], %s320_s17 }
 0x13b   : > { %p400_p7 = pnand %p403_p4, %p575_p6 }
 0x13d   : > { %p401_p8 = pneg %p400_p7 }
 0x13f   : > { %492 = dma.done.wait (%p401_p8), %s321_s19, 512  }
 0x140   : > { %494 = vsyncadd (%p401_p8), %s321_s19, 4294966784  ;;  %p13_p9 = scmp.ge.s32.totalorder %s558_s18, 4   ;;  %s659_s12 = smov %s501_s13 }
 0x141   : > { %s660_s13 = smov %s505_s14  ;;  %s661_s14 = smov %s569_s21 }
 0x142   : > { %s662_s15 = smov %s558_s18  ;;  %15 = sbr.rel (!%p13_p9) target bundleno = 3 (0x3), region = 67 }
 0x147   :  { %327 = vsyncpa [#allocation3], 1 }
 0x148   :  { %329 = vsyncpa [#allocation3 + $0x1], 1 }

// kernel: tpu_custom_call.1
= control target key start
LH: loop header
LB: loop body
LE: loop exit
PB: predicated region body
PF: predicated region fallthrough
CT: control target
= control target key end

     0   :  { %8 = vsyncpa [#allocation3], 0  ;;  %s653_s0 = inlined_call_operand.vmem [shape: f32[64,32], index: 0, kind: input, shape index: {}]   ;;  %s654_s1 = inlined_call_operand.vmem [shape: f32[32,128], index: 1, kind: input, shape index: {}]   ;;  %s655_s2 = inlined_call_operand.vmem [shape: f32[1,128], index: 2, kind: input, shape index: {}]   ;;  %s656_s3 = inlined_call_operand.hbm [shape: f32[64,128], index: 3, kind: output, shape index: {}]  }
   0x1   :  { %10 = vsyncpa [#allocation3 + $0x1], 0  ;;  %s533_s12 = smov 0   ;;  %s535_s13 = smov 0  }
   0x2   :  { %s537_s14 = smov 0   ;;  %s539_s15 = smov 0  }
   0x3 LB: > { %s554_s16 = sadd.s32 4294967295, %s509_s15   ;;  %s368_s17 = sadd.s32 4294967294, %s509_s15   ;;  %s509_s15 = sphi %s539_s15, %s662_s15   ;;  %s505_s14 = sphi %s537_s14, %s661_s14   ;;  %s501_s13 = sphi %s535_s13, %s660_s13   ;;  %s497_s12 = sphi %s533_s12, %s659_s12  }
   0x4   : > { %s558_s18 = sadd.s32 1, %s509_s15   ;;  %s91_s19 = sadd.s32 1, %s505_s14 }
   0x5   : > { %s88_s20 = ssub.s32 %s509_s15, %s558_s18  ;;  %p101_p0 = scmp.ne.s32.totalorder %s505_s14, %s501_s13 }
   0x6   : > { %p89_p1 = scmp.eq.s32.totalorder %s88_s20, 0  ;;  %p102_p2 = scmp.eq.s32.totalorder %s554_s16, 1 }
   0x7   : > { %p107_p3 = scmp.ne.s32.totalorder %s501_s13, %s497_s12  ;;  %p108_p4 = scmp.eq.s32.totalorder %s368_s17, 1 }
   0x8   : > { %s569_s21 = scalar_select %p89_p1, %s505_s14, %s91_s19  }
   0x9   : > { %p571_p5 = por %p102_p2, %p101_p0  ;;  %p575_p6 = por %p108_p4, %p107_p3 }
   0xa   : > { %p371_p7 = scmp.ge.s32.totalorder %s509_s15, 1  ;;  %p141_p8 = scmp.lt.s32.totalorder %s509_s15, 3 }
   0xc   : > { %p142_p9 = pnand %p371_p7, %p141_p8 }
   0xd   : > { %s373_s28 = sshll.u32 (!%p142_p9), %s554_s16, 2  ;;  %s162_s17 = sand.u32 (!%p142_p9), 1, %s501_s13  }
   0xe   : > { %145 = sbr.rel (%p142_p9) target bundleno = 313 (0x139), region = 32  ;;  %p166_p10 = scmp.lt.s32.totalorder (!%p142_p9), %s373_s28, 7 }
   0xf   : > { %s372_s19 = sshll.u32 (!%p142_p9), %s162_s17, 5  ;;  %s384_s24 = sshll.u32 (!%p142_p9), %s554_s16, 5 }
  0x10   : > { %s611_s20 = scalar_lea.vmem (!%p142_p9), [#allocation2], %s372_s19  ;;  %s302_s27 = scalar_lea.hbm (!%p142_p9), %s656_s3, %s384_s24 }
  0x11   : > { %s303_s16 = sshll.u32 (!%p142_p9), %s611_s20, 4  ;;  %s291_s29 = scalar_lea.sflag (!%p142_p9), [#allocation3], %s162_s17  ;;  %s304_s16 = int_to_ptr.vmem [resolvable:$true] %s303_s16 }
  0x12   : > { %s467_s7 = scalar_lea.hbm (!%p142_p9), %s656_s3, 64 }
  0x13   : > { %v179_v0 = vld [vmem:[%s654_s1 + $0x18] sm:$0xff]  ;;  %v178_v1 = vld [vmem:[%s654_s1 + $0x10] sm:$0xff]  ;;  %v177_v2 = vld [vmem:[%s654_s1 + $0x8] sm:$0xff]  ;;  %s664_s28 = smov (!%p166_p10, %s373_s28), 7  ;;  %vm184_vm0 = vcmask 261120  }
  0x14   : > { %209 = vmatpush.msra.mxu0 %v179_v0  ;;  %386 = vmatpush.msra.mxu2 %v179_v0  ;;  %v176_v3 = vld [vmem:[%s654_s1] sm:$0xff]  ;;  %s374_s6 = sshll.u32 %s664_s28, 3  ;;  %s305_s28 = sshll.u32 %s302_s27, 4  ;;  %s306_s28 = int_to_ptr.hbm [resolvable:$true] %s305_s28 }
  0x15   : > { %385 = vmatpush.msra.mxu1 %v179_v0  ;;  %387 = vmatpush.msra.mxu3 %v179_v0  ;;  %s169_s9 = scalar_lea.vmem %s653_s0, %s374_s6  ;;  %v438_v8 = vld [vmem:[%s655_s2] ss:$0 sm:$0xff]  ;;  %s461_s30 = sshra.s32 %s306_s28, 4  ;;  %s462_s30 = int_to_ptr.hbm [resolvable:$true] %s461_s30 }
  0x16   : > { %210 = vmatpush.msra.mxu0 %v178_v1  ;;  %389 = vmatpush.msra.mxu2 %v178_v1  ;;  %v172_v4 = vld [vmem:[%s169_s9] sm:$0xff]  ;;  %v174_v5 = vld [vmem:[%s169_s9 + $0x10] sm:$0xff]  ;;  %v173_v6 = vld [vmem:[%s169_s9 + $0x8] sm:$0xff]  ;;  %s463_s4 = scalar_lea.hbm %s462_s30, 32  ;;  %p468_p0 = scmp.lt.s32.totalorder %s462_s30, %s656_s3 }
  0x17   : > { %388 = vmatpush.msra.mxu1 %v178_v1  ;;  %390 = vmatpush.msra.mxu3 %v178_v1  ;;  %v175_v7 = vld [vmem:[%s169_s9 + $0x18] sm:$0xff]  ;;  %p464_p11 = scmp.ne.s32.totalorder %s462_s30, %s463_s4  ;;  %p469_p1 = scmp.lt.s32.totalorder %s467_s7, %s463_s4 }
  0x18   : > { %211 = vmatpush.msra.mxu0 %v177_v2  ;;  %392 = vmatpush.msra.mxu2 %v177_v2 }
  0x19   : > { %391 = vmatpush.msra.mxu1 %v177_v2  ;;  %393 = vmatpush.msra.mxu3 %v177_v2  ;;  %p465_p12 = pnand %p464_p11, %p571_p5  ;;  %p470_p2 = por %p469_p1, %p468_p0 }
  0x1a   : > { %212 = vmatpush.msra.mxu0 %v176_v3  ;;  %395 = vmatpush.msra.mxu2 %v176_v3 }
  0x1b   : > { %375 = vmatmul.msk.f32.vlgmr.msra.gmra.mxu0 %vm184_vm0, %v172_v4  ;;  %377 = vmatmul.msk.f32.vlgmr.msra.gmra.mxu2 %vm184_vm0, %v174_v5  ;;  %p466_p13 = pneg %p465_p12 }
  0x1c   : > { %394 = vmatpush.msra.mxu1 %v176_v3  ;;  %396 = vmatpush.msra.mxu3 %v176_v3 }
  0x1d   : > { %376 = vmatmul.msk.f32.vlgmr.msra.gmra.mxu1 %vm184_vm0, %v173_v6  ;;  %378 = vmatmul.msk.f32.vlgmr.msra.gmra.mxu3 %vm184_vm0, %v175_v7  ;;  %p471_p3 = pnand %p470_p2, %p466_p13 }
  0x98   : > { %v214_v9 = vpop.f32.mrf.mxu0 }
  0x99   : > { %v215_v10 = vadd.f32 %v438_v8, %v214_v9 }
  0x9a   : > { %v217_v11 = vpop.f32.mrf.mxu1 }
  0x9b   : > { %v226_v12 = vmul.f32 %v215_v10, %v215_v10  ;;  %v600_v13 = vadd.f32 %v438_v8, %v217_v11 }
  0x9d   : > { %230 = vadd.xlane.f32.xlu0 %v226_v12  ;;  %v227_v18 = vmul.f32 %v600_v13, %v600_v13 }
  0x9e   : > { %v220_v14 = vpop.f32.mrf.mxu2 }
  0x9f   : > { %v221_v15 = vadd.f32 %v438_v8, %v220_v14 }
  0xa0   : > { %v223_v16 = vpop.f32.mrf.mxu3 }
  0xa1   : > { %v228_v17 = vmul.f32 %v221_v15, %v221_v15  ;;  %v604_v19 = vadd.f32 %v438_v8, %v223_v16 }
  0xa3   : > { %234 = vadd.xlane.f32.xlu1 %v228_v17  ;;  %v229_v20 = vmul.f32 %v604_v19, %v604_v19 }
  0xa5   : > { %232 = vadd.xlane.f32.xlu0 %v227_v18 }
  0xab   : > { %236 = vadd.xlane.f32.xlu1 %v229_v20 }
 0x110   : > { %v231_v21 = vpop.xlane.xlu0 %230 }
 0x111   : > { %v238_v22 = vmax.f32 %v231_v21, 1e-12 }
 0x113   : > { %439 = vrsqrt.f32 %v238_v22  ;;  %vm248_vm1 = vweird.f32 %v238_v22 }
 0x116   : > { %v235_v23 = vpop.xlane.xlu1 %234 }
 0x117   : > { %v240_v24 = vmax.f32 %v235_v23, 1e-12 }
 0x118   : > { %v233_v25 = vpop.xlane.xlu0 %232 }
 0x119   : > { %v440_v26 = vpop.eup %439  ;;  %441 = vrsqrt.f32 %v240_v24  ;;  %v239_v27 = vmax.f32 %v233_v25, 1e-12  ;;  %vm268_vm5 = vweird.f32 %v240_v24 }
 0x11a   : > { %v243_v28 = vmul.f32 %v440_v26, %v238_v22  ;;  %vm249_vm2 = vweird.f32 %v440_v26 }
 0x11b   : > { %443 = vrsqrt.f32 %v239_v27  ;;  %vm250_vm3 = vmor %vm248_vm1, %vm249_vm2  ;;  %vm258_vm6 = vweird.f32 %v239_v27 }
 0x11c   : > { %v244_v29 = vmul.f32 %v440_v26, %v243_v28 }
 0x11e   : > { %v245_v30 = vmul.f32 0.5, %v244_v29  ;;  %v237_v31 = vpop.xlane.xlu1 %236 }
 0x11f   : > { %v442_v32 = vpop.eup %441  ;;  %v241_v33 = vmax.f32 %v237_v31, 1e-12 }
 0x120   : > { %v246_v34 = vsub.f32 1.5, %v245_v30  ;;  %v263_v35 = vmul.f32 %v442_v32, %v240_v24  ;;  %vm269_vm4 = vweird.f32 %v442_v32 }
 0x121   : > { %v444_v36 = vpop.eup %443  ;;  %445 = vrsqrt.f32 %v241_v33  ;;  %vm270_vm8 = vmor %vm268_vm5, %vm269_vm4  ;;  %vm278_vm11 = vweird.f32 %v241_v33 }
 0x122   : > { %v247_v37 = vmul.f32 %v440_v26, %v246_v34  ;;  %v264_v38 = vmul.f32 %v442_v32, %v263_v35  ;;  %v253_v39 = vmul.f32 %v444_v36, %v239_v27  ;;  %vm259_vm7 = vweird.f32 %v444_v36 }
 0x123   : > { %vm260_vm9 = vmor %vm258_vm6, %vm259_vm7 }
 0x124   : > { %v251_v40 = vsel %vm250_vm3, %v440_v26, %v247_v37  ;;  %v265_v41 = vmul.f32 0.5, %v264_v38  ;;  %v254_v42 = vmul.f32 %v444_v36, %v253_v39 }
 0x125   : > { %v282_v43 = vmul.f32 %v251_v40, %v215_v10 }
 0x126   : > { %v266_v44 = vsub.f32 1.5, %v265_v41  ;;  %v255_v45 = vmul.f32 0.5, %v254_v42 }
 0x127   : > { %v446_v46 = vpop.eup %445  ;;  %286 = vst [vmem:[%s611_s20] sm:$0xff] %v282_v43 }
 0x128   : > { %v267_v47 = vmul.f32 %v442_v32, %v266_v44  ;;  %v256_v48 = vsub.f32 1.5, %v255_v45  ;;  %v273_v49 = vmul.f32 %v446_v46, %v241_v33  ;;  %vm279_vm10 = vweird.f32 %v446_v46 }
 0x129   : > { %vm280_vm12 = vmor %vm278_vm11, %vm279_vm10 }
 0x12a   : > { %v271_v50 = vsel %vm270_vm8, %v442_v32, %v267_v47  ;;  %v257_v51 = vmul.f32 %v444_v36, %v256_v48  ;;  %v274_v52 = vmul.f32 %v446_v46, %v273_v49 }
 0x12b   : > { %v284_v53 = vmul.f32 %v271_v50, %v221_v15 }
 0x12c   : > { %v261_v54 = vsel %vm260_vm9, %v444_v36, %v257_v51  ;;  %v275_v55 = vmul.f32 0.5, %v274_v52 }
 0x12d   : > { %288 = vst [vmem:[%s611_s20 + $0x10] sm:$0xff] %v284_v53  ;;  %v283_v56 = vmul.f32 %v261_v54, %v600_v13 }
 0x12e   : > { %v276_v57 = vsub.f32 1.5, %v275_v55 }
 0x12f   : > { %287 = vst [vmem:[%s611_s20 + $0x8] sm:$0xff] %v283_v56 }
 0x130   : > { %v277_v58 = vmul.f32 %v446_v46, %v276_v57 }
 0x132   : > { %v281_v59 = vsel %vm280_vm12, %v446_v46, %v277_v58 }
 0x133   : > { %v285_v60 = vmul.f32 %v281_v59, %v604_v19 }
 0x135   : > { %289 = vst [vmem:[%s611_s20 + $0x18] sm:$0xff] %v285_v60 }
 0x136   : > { %474 = shalt.err (!%p471_p3)
}
 0x137   : > { %s511_s10 = smov 128   ;;  %s512_s11 = smov 8  }
 0x138   : > { %397 = dma.vmem_to_hbm [thread:$0]  (%p571_p5), %s304_s16, 512, %s306_s28, %s291_s29, %s511_s10, %s511_s10, %s512_s11  }
 0x139 PF: > { %p403_p4 = scmp.ge.s32.totalorder %s509_s15, 2  ;;  %s320_s17 = sand.u32 1, %s497_s12  }
 0x13a   : > { %s321_s19 = scalar_lea.sflag [#allocation3], %s320_s17 }
 0x13b   : > { %p400_p7 = pnand %p403_p4, %p575_p6 }
 0x13d   : > { %p401_p8 = pneg %p400_p7 }
 0x13f   : > { %492 = dma.done.wait (%p401_p8), %s321_s19, 512  }
 0x140   : > { %494 = vsyncadd (%p401_p8), %s321_s19, 4294966784  ;;  %p13_p9 = scmp.ge.s32.totalorder %s558_s18, 4   ;;  %s659_s12 = smov %s501_s13 }
 0x141   : > { %s660_s13 = smov %s505_s14  ;;  %s661_s14 = smov %s569_s21 }
 0x142   : > { %s662_s15 = smov %s558_s18  ;;  %15 = sbr.rel (!%p13_p9) target bundleno = 3 (0x3), region = 67 }
 0x147   :  { %327 = vsyncpa [#allocation3], 1 }
 0x148   :  { %329 = vsyncpa [#allocation3 + $0x1], 1 }

</bundles_post_ra>
